<compile_context>
chip_gen: v7x
topology: tpu7x:2x2x1
jax: 0.10.0
libtpu: 0.0.40
codegen_flags: <defaults>
</compile_context>

<pallas_src>
import functools

import jax
import jax.numpy as jnp
from jax import lax
from jax.experimental import pallas as pl
from jax.experimental.pallas import tpu as pltpu


# --------------------------- kernel 1: GroupNorm scale/shift ---------------------------
def gn_scale_shift_kernel(x_ref, mask_mean_ref, mask_t_ref, gamma_ref, beta_ref,
                          scale_ref, shift_ref, sum_ref, sq_ref):
    n = pl.program_id(1)

    @pl.when(n == 0)
    def _():
        sum_ref[...] = jnp.zeros_like(sum_ref)
        sq_ref[...] = jnp.zeros_like(sq_ref)

    x = x_ref[0].astype(jnp.float32)                         # (tn, C)
    tn_, c_ = x.shape
    xr = x.reshape(tn_ // 8, 8, c_)                          # split along sublane groups
    # VPU-only partial sums: elementwise adds of (8,C) slabs, no XLU in the hot loop.
    sum_ref[...] += jnp.sum(xr, axis=0)                      # (8, C)
    sq_ref[...] += jnp.sum(xr * xr, axis=0)                  # (8, C)

    @pl.when(n == pl.num_programs(1) - 1)
    def _():
        s1 = jnp.sum(sum_ref[...], axis=0, keepdims=True)    # (1, C) one-time collapse
        s2 = jnp.sum(sq_ref[...], axis=0, keepdims=True)
        # mask_mean already carries 1/(N*Cg): one dot gives [E[x], E[x^2]] per group.
        sg = jnp.dot(jnp.concatenate([s1, s2], axis=0), mask_mean_ref[...],
                     preferred_element_type=jnp.float32)     # (2, G)
        mean_g = sg[0:1]
        # TODO(synk): single-pass E[x^2]-E[x]^2 variance; use two-pass/Welford if
        # activations are far from zero-mean.
        var_g = sg[1:2] - mean_g * mean_g
        mv_c = jnp.dot(jnp.concatenate([mean_g, var_g], axis=0), mask_t_ref[...],
                       preferred_element_type=jnp.float32)   # (2, C) broadcast to channels
        rstd_c = lax.rsqrt(mv_c[1:2] + 1e-6)
        scale = rstd_c * gamma_ref[...]
        shift = beta_ref[...] - mv_c[0:1] * scale
        scale_ref[0] = scale
        shift_ref[0] = shift


# --------------------------- kernel 2: fused QKV projection ---------------------------
def qkv_proj_kernel(x_ref, scale_ref, shift_ref, wqkv_ref, bqkv_ref,
                    q_ref, k_ref, v_ref):
    x = x_ref[0].astype(jnp.float32)                                   # (tn, C)
    hn = (x * scale_ref[0] + shift_ref[0]).astype(jnp.bfloat16)        # GroupNorm (folded)
    qkv = jnp.dot(hn, wqkv_ref[...],
                  preferred_element_type=jnp.float32) + bqkv_ref[...]  # (tn, 3C)
    c = q_ref.shape[-1]
    # split into three contiguous (B,N,C) streams -> contiguous K/V tiles in pass 3
    q_ref[0] = qkv[:, :c].astype(jnp.bfloat16)
    k_ref[0] = qkv[:, c:2 * c].astype(jnp.bfloat16)
    v_ref[0] = qkv[:, 2 * c:].astype(jnp.bfloat16)


# --------------------------- kernel 3: flash attention + proj_out ----------------------
def flash_attn_kernel(q_ref, k_ref, v_ref, xr_ref, wpt_ref, bp_ref, o_ref,
                      m_buf, l_buf, acc_buf, *, tk):
    kv = pl.program_id(2)

    @pl.when(kv == 0)
    def _():
        m_buf[...] = jnp.full_like(m_buf, -jnp.inf)
        l_buf[...] = jnp.zeros_like(l_buf)
        acc_buf[...] = jnp.zeros_like(acc_buf)

    q = q_ref[0]                                             # (tq, C) bf16, C**-0.5 folded in
    # K/V are VMEM-resident for the whole batch: slice the current kv tile in place.
    start = pl.multiple_of(kv * tk, tk)
    k = k_ref[0, pl.ds(start, tk), :]                        # (tk, C) bf16
    v = v_ref[0, pl.ds(start, tk), :]                        # (tk, C) bf16

    # score = q @ k^T without materializing a transposed copy of k
    s = lax.dot_general(q, k, (((1,), (1,)), ((), ())),
                        preferred_element_type=jnp.float32)  # (tq, tk) f32

    m_prev = m_buf[...]
    m_new = jnp.maximum(m_prev, jnp.max(s, axis=-1, keepdims=True))
    alpha = jnp.exp(m_prev - m_new)
    p = jnp.exp(s - m_new)                                   # unnormalized probs (f32)
    l_buf[...] = alpha * l_buf[...] + jnp.sum(p, axis=-1, keepdims=True)
    acc_buf[...] = alpha * acc_buf[...] + jnp.dot(p.astype(jnp.bfloat16), v,
                                                  preferred_element_type=jnp.float32)
    m_buf[...] = m_new

    @pl.when(kv == pl.num_programs(2) - 1)
    def _():
        # exact softmax normalization (once per q-tile, essentially free)
        h = (acc_buf[...] / l_buf[...]).astype(jnp.bfloat16)            # (tq, C)
        # out^T (C, tq) computed directly: contract wp^T's Cin with h's Cin (same
        # dot_general orientation as the score matmul) -> NCHW output, no transpose op.
        out_t = lax.dot_general(wpt_ref[...], h, (((1,), (1,)), ((), ())),
                                preferred_element_type=jnp.float32)     # (C, tq)
        out_t = out_t + bp_ref[...]                                     # (C,1) bias column
        o_ref[0] = (xr_ref[0].astype(jnp.float32) + out_t).astype(o_ref.dtype)


# --------------------------------------- wrapper ---------------------------------------
def _tpu_generation():
    """Best-effort TPU generation probe (per-gen tile/VMEM config)."""
    try:
        kind = jax.devices()[0].device_kind.lower()
    except Exception:
        return 6
    for g in (7, 6, 5, 4, 3):
        if f"v{g}" in kind:
            return g
    return 6


def attn_block(x_nchw, params, *, tq=None, tk=None, tn=None):
    """x_nchw: (B, C, H, W) float32. params: dict from init_params."""
    B, C, H, W = x_nchw.shape
    N = H * W
    G = params["num_groups"]
    cg = C // G
    assert C % G == 0
    # lane-dense layout: keep the channel (lane) dim a multiple of 128
    assert C % 128 == 0, "pad channels (group-aware) to a multiple of 128 before calling"

    gen = _tpu_generation()
    mxu_tile = 256 if gen >= 6 else 128          # v6e/v7x: 2x256^2 MXU; v5e: 128-wide
    if tq is None:
        tq = mxu_tile
    if tk is None:
        tk = mxu_tile
    if tn is None:
        tn = 512                                  # streaming passes near HBM roofline
    tq, tk, tn = min(tq, N), min(tk, N), min(tn, N)
    assert N % tq == 0 and N % tk == 0 and N % tn == 0 and tn % 8 == 0
    vmem_cap = (48 if gen >= 7 else 64) * 1024 * 1024   # v7x has 64 MiB/TC physical

    # layout: keep GN/QKV in (B,N,C); residual + output stay NCHW (reshape is free),
    # so only ONE host transpose remains (input side).
    # TODO(synk): keep surrounding layers in NHWC to drop the remaining input transpose.
    x_l = jnp.transpose(x_nchw, (0, 2, 3, 1)).reshape(B, N, C)   # (B, N, C)
    x_r = x_nchw.reshape(B, C, N)                                # (B, C, N), free reshape

    # host-side weight prep: fold C**-0.5 into q, fuse qkv, cast MXU weights to bf16
    inv_sqrt_c = float(C) ** -0.5
    wqkv = jnp.concatenate([params["wq"] * inv_sqrt_c, params["wk"], params["wv"]],
                           axis=1).astype(jnp.bfloat16)           # (C, 3C)
    bqkv = jnp.concatenate([params["bq"] * inv_sqrt_c, params["bk"], params["bv"]],
                           axis=1).astype(jnp.float32)            # (1, 3C)
    wp_t = params["wp"].T.astype(jnp.bfloat16)                    # (Cout, Cin) for out^T dot
    bp_t = params["bp"].reshape(C, 1).astype(jnp.float32)         # (C, 1) bias column
    mask_mean = params["group_mask"] * (1.0 / (N * cg))           # (C, G) with 1/count folded
    mask_t = params["group_mask_t"]                               # (G, C)
    gamma, beta = params["gamma"], params["beta"]                 # (1, C) each

    # --- pass 1: GroupNorm per-channel scale/shift --------------------------------
    # TODO(synk): on v7x with B==1 this pass uses only one TensorCore; split the N
    # reduction into two parallel halves + a tiny combine if that matters.
    scale_c, shift_c = pl.pallas_call(
        gn_scale_shift_kernel,
        out_shape=(jax.ShapeDtypeStruct((B, 1, C), jnp.float32),
                   jax.ShapeDtypeStruct((B, 1, C), jnp.float32)),
        grid_spec=pltpu.PrefetchScalarGridSpec(
            num_scalar_prefetch=0,
            grid=(B, N // tn),
            in_specs=[
                pl.BlockSpec((1, tn, C), lambda b, n: (b, n, 0)),   # x tile
                pl.BlockSpec((C, G), lambda b, n: (0, 0)),          # group one-hot / count
                pl.BlockSpec((G, C), lambda b, n: (0, 0)),          # group one-hot transposed
                pl.BlockSpec((1, C), lambda b, n: (0, 0)),          # gamma
                pl.BlockSpec((1, C), lambda b, n: (0, 0)),          # beta
            ],
            out_specs=[pl.BlockSpec((1, 1, C), lambda b, n: (b, 0, 0)),
                       pl.BlockSpec((1, 1, C), lambda b, n: (b, 0, 0))],
            scratch_shapes=[pltpu.VMEM((8, C), jnp.float32),        # sum partials
                            pltpu.VMEM((8, C), jnp.float32)],       # sum-of-squares partials
        ),
        compiler_params=pltpu.CompilerParams(
            dimension_semantics=("parallel", "arbitrary"),
            vmem_limit_bytes=vmem_cap),
    )(x_l, mask_mean, mask_t, gamma, beta)

    # --- pass 2: normalize + fused QKV projection, split q/k/v outputs ------------
    q_a, k_a, v_a = pl.pallas_call(
        qkv_proj_kernel,
        out_shape=(jax.ShapeDtypeStruct((B, N, C), jnp.bfloat16),
                   jax.ShapeDtypeStruct((B, N, C), jnp.bfloat16),
                   jax.ShapeDtypeStruct((B, N, C), jnp.bfloat16)),
        grid_spec=pltpu.PrefetchScalarGridSpec(
            num_scalar_prefetch=0,
            grid=(B, N // tn),
            in_specs=[
                pl.BlockSpec((1, tn, C), lambda b, n: (b, n, 0)),   # x tile
                pl.BlockSpec((1, 1, C), lambda b, n: (b, 0, 0)),    # scale
                pl.BlockSpec((1, 1, C), lambda b, n: (b, 0, 0)),    # shift
                pl.BlockSpec((C, 3 * C), lambda b, n: (0, 0)),      # fused W_qkv (bf16)
                pl.BlockSpec((1, 3 * C), lambda b, n: (0, 0)),      # fused b_qkv
            ],
            out_specs=[pl.BlockSpec((1, tn, C), lambda b, n: (b, n, 0)),
                       pl.BlockSpec((1, tn, C), lambda b, n: (b, n, 0)),
                       pl.BlockSpec((1, tn, C), lambda b, n: (b, n, 0))],
        ),
        compiler_params=pltpu.CompilerParams(
            dimension_semantics=("parallel", "parallel"),
            vmem_limit_bytes=vmem_cap),
    )(x_l, scale_c, shift_c, wqkv, bqkv)

    # --- pass 3: flash attention + proj_out + residual, NCHW output ----------------
    out = pl.pallas_call(
        functools.partial(flash_attn_kernel, tk=tk),
        out_shape=jax.ShapeDtypeStruct((B, C, N), x_nchw.dtype),
        grid_spec=pltpu.PrefetchScalarGridSpec(
            num_scalar_prefetch=0,
            grid=(B, N // tq, N // tk),
            in_specs=[
                pl.BlockSpec((1, tq, C), lambda b, i, kv: (b, i, 0)),  # q tile
                pl.BlockSpec((1, N, C), lambda b, i, kv: (b, 0, 0)),   # K resident per batch
                pl.BlockSpec((1, N, C), lambda b, i, kv: (b, 0, 0)),   # V resident per batch
                pl.BlockSpec((1, C, tq), lambda b, i, kv: (b, 0, i)),  # residual (NCHW)
                pl.BlockSpec((C, C), lambda b, i, kv: (0, 0)),         # wp^T (bf16)
                pl.BlockSpec((C, 1), lambda b, i, kv: (0, 0)),         # bp column
            ],
            out_specs=pl.BlockSpec((1, C, tq), lambda b, i, kv: (b, 0, i)),
            scratch_shapes=[
                pltpu.VMEM((tq, 1), jnp.float32),   # running max
                pltpu.VMEM((tq, 1), jnp.float32),   # running denom
                pltpu.VMEM((tq, C), jnp.float32),   # output accumulator
            ],
        ),
        compiler_params=pltpu.CompilerParams(
            dimension_semantics=("parallel", "parallel", "arbitrary"),
            vmem_limit_bytes=vmem_cap),
    )(q_a, k_a, v_a, x_r, wp_t, bp_t)

    return out.reshape(B, C, H, W)


# --------------------------------------- params ---------------------------------------
def init_params(key, C, num_groups=32):
    ks = jax.random.split(key, 9)
    scale = 0.05
    # 1x1 conv weights are (Cout, Cin); store as (Cin, Cout) for row-major matmul
    def conv_w(k):
        return (scale * jax.random.normal(k, (C, C), jnp.float32)).T
    def conv_b(k):
        return scale * jax.random.normal(k, (1, C), jnp.float32)
    cg = C // num_groups
    group_ids = jnp.arange(C) // cg
    group_mask = jax.nn.one_hot(group_ids, num_groups, dtype=jnp.float32)   # (C, G)
    return {
        "num_groups": num_groups,
        "group_mask": group_mask,
        "group_mask_t": group_mask.T,
        "gamma": 1.0 + 0.1 * jax.random.normal(ks[0], (1, C), jnp.float32),
        "beta": 0.1 * jax.random.normal(ks[1], (1, C), jnp.float32),
        "wq": conv_w(ks[2]), "bq": conv_b(ks[3]),
        "wk": conv_w(ks[4]), "bk": conv_b(ks[5]),
        "wv": conv_w(ks[6]), "bv": conv_b(ks[7]),
        "wp": conv_w(ks[8]), "bp": conv_b(jax.random.fold_in(ks[8], 1)),
    }


def attn_block_ref(x_nchw, params):
    """Pure-JAX reference mirroring the PyTorch forward, for correctness check."""
    B, C, H, W = x_nchw.shape
    N = H * W
    G = params["num_groups"]
    x = x_nchw.astype(jnp.float32)
    xg = x.reshape(B, G, C // G, H, W)
    mean = jnp.mean(xg, axis=(2, 3, 4), keepdims=True)
    var = jnp.mean((xg - mean) ** 2, axis=(2, 3, 4), keepdims=True)
    hn = ((xg - mean) / jnp.sqrt(var + 1e-6)).reshape(B, C, H, W)
    hn = hn * params["gamma"].reshape(1, C, 1, 1) + params["beta"].reshape(1, C, 1, 1)
    hl = jnp.transpose(hn, (0, 2, 3, 1)).reshape(B, N, C)
    q = hl @ params["wq"] + params["bq"]
    k = hl @ params["wk"] + params["bk"]
    v = hl @ params["wv"] + params["bv"]
    w = jnp.einsum("bic,bjc->bij", q, k) * (float(C) ** -0.5)
    w = jax.nn.softmax(w, axis=-1)
    h = jnp.einsum("bij,bjc->bic", w, v)
    out = h @ params["wp"] + params["bp"]
    out = jnp.transpose(out.reshape(B, H, W, C), (0, 3, 1, 2))
    return x + out


if __name__ == "__main__":
    # C must be a multiple of 32 (GroupNorm) and of 128 (lane-dense kernel layout).
    B, C, H, W = 2, 128, 16, 16
    key = jax.random.PRNGKey(0)
    kx, kp = jax.random.split(key)
    x = jax.random.normal(kx, (B, C, H, W), jnp.float32)
    params = init_params(kp, C, num_groups=32)

    y = attn_block(x, params)
    jax.block_until_ready(y)

    y_ref = attn_block_ref(x, params)
    assert y.shape == (B, C, H, W)
    # bf16 MXU operands -> loosen tolerance vs the f32 reference.
    assert jnp.allclose(y, y_ref, rtol=2e-2, atol=2e-2), float(jnp.max(jnp.abs(y - y_ref)))

    print("KERNEL_OK")
</pallas_src>

<mosaic_0001>
module attributes {stable_mosaic.version = 11 : i64} {
  func.func @gn_scale_shift_kernel(%arg0: i32, %arg1: i32, %arg2: memref<1x256x128xf32, #tpu.memory_space<vmem>>, %arg3: memref<128x32xf32, #tpu.memory_space<vmem>>, %arg4: memref<32x128xf32, #tpu.memory_space<vmem>>, %arg5: memref<1x128xf32, #tpu.memory_space<vmem>>, %arg6: memref<1x128xf32, #tpu.memory_space<vmem>>, %arg7: memref<1x1x128xf32, #tpu.memory_space<vmem>>, %arg8: memref<1x1x128xf32, #tpu.memory_space<vmem>>, %arg9: memref<8x128xf32, #tpu.memory_space<vmem>>, %arg10: memref<8x128xf32, #tpu.memory_space<vmem>>) attributes {dimension_semantics = [#tpu.dimension_semantics<parallel>, #tpu.dimension_semantics<arbitrary>], iteration_bounds = array<i64: 2, 1>, scalar_prefetch = 0 : i64, scratch_operands = 2 : i64, tpu.core_type = #tpu.core_type<tc>, window_params = [{transform_indices = @transform_0, window_bounds = array<i64: 1, 256, 128>}, {pipeline_mode = #tpu.pipeline_mode<synchronous>, transform_indices = @transform_1, window_bounds = array<i64: 128, 32>}, {pipeline_mode = #tpu.pipeline_mode<synchronous>, transform_indices = @transform_2, window_bounds = array<i64: 32, 128>}, {pipeline_mode = #tpu.pipeline_mode<synchronous>, transform_indices = @transform_3, window_bounds = array<i64: 1, 128>}, {pipeline_mode = #tpu.pipeline_mode<synchronous>, transform_indices = @transform_4, window_bounds = array<i64: 1, 128>}, {transform_indices = @transform_5, window_bounds = array<i64: 1, 1, 128>}, {transform_indices = @transform_6, window_bounds = array<i64: 1, 1, 128>}]} {
    %c0_i32 = arith.constant 0 : i32
    %0 = arith.cmpi eq, %arg1, %c0_i32 : i32
    %1 = arith.extui %0 : i1 to i32
    %c0_i32_0 = arith.constant 0 : i32
    %2 = arith.cmpi ne, %1, %c0_i32_0 : i32
    scf.if %2 {
      %cst_14 = arith.constant 0.000000e+00 : f32
      %18 = vector.broadcast %cst_14 : f32 to vector<8x128xf32>
      %c0_15 = arith.constant 0 : index
      %c0_16 = arith.constant 0 : index
      %19 = vector.load %arg9[%c0_15, %c0_16] : memref<8x128xf32, #tpu.memory_space<vmem>>, vector<8x128xf32>
      tpu.vector_store %arg9[%c0_15, %c0_16], %18 {strides = array<i32>} : memref<8x128xf32, #tpu.memory_space<vmem>>, vector<8x128xf32>,
      %cst_17 = arith.constant 0.000000e+00 : f32
      %20 = vector.broadcast %cst_17 : f32 to vector<8x128xf32>
      %c0_18 = arith.constant 0 : index
      %c0_19 = arith.constant 0 : index
      %21 = vector.load %arg10[%c0_18, %c0_19] : memref<8x128xf32, #tpu.memory_space<vmem>>, vector<8x128xf32>
      tpu.vector_store %arg10[%c0_18, %c0_19], %20 {strides = array<i32>} : memref<8x128xf32, #tpu.memory_space<vmem>>, vector<8x128xf32>,
    } else {
    }
    %c0 = arith.constant 0 : index
    %c0_1 = arith.constant 0 : index
    %c0_2 = arith.constant 0 : index
    %3 = vector.load %arg2[%c0, %c0_1, %c0_2] : memref<1x256x128xf32, #tpu.memory_space<vmem>>, vector<1x256x128xf32>
    %4 = vector.shape_cast %3 : vector<1x256x128xf32> to vector<256x128xf32>
    %5 = vector.shape_cast %4 : vector<256x128xf32> to vector<32x8x128xf32>
    %c0_3 = arith.constant 0 : index
    %c0_4 = arith.constant 0 : index
    %6 = vector.load %arg9[%c0_3, %c0_4] : memref<8x128xf32, #tpu.memory_space<vmem>>, vector<8x128xf32>
    %cst = arith.constant dense<0.000000e+00> : vector<8x128xf32>
    %7 = vector.multi_reduction <add>, %5, %cst [0] : vector<32x8x128xf32> to vector<8x128xf32>
    %8 = arith.addf %6, %7 : vector<8x128xf32>
    %c0_5 = arith.constant 0 : index
    %c0_6 = arith.constant 0 : index
    %9 = vector.load %arg9[%c0_5, %c0_6] : memref<8x128xf32, #tpu.memory_space<vmem>>, vector<8x128xf32>
    tpu.vector_store %arg9[%c0_5, %c0_6], %8 {strides = array<i32>} : memref<8x128xf32, #tpu.memory_space<vmem>>, vector<8x128xf32>,
    %c0_7 = arith.constant 0 : index
    %c0_8 = arith.constant 0 : index
    %10 = vector.load %arg10[%c0_7, %c0_8] : memref<8x128xf32, #tpu.memory_space<vmem>>, vector<8x128xf32>
    %11 = arith.mulf %5, %5 : vector<32x8x128xf32>
    %cst_9 = arith.constant dense<0.000000e+00> : vector<8x128xf32>
    %12 = vector.multi_reduction <add>, %11, %cst_9 [0] : vector<32x8x128xf32> to vector<8x128xf32>
    %13 = arith.addf %10, %12 : vector<8x128xf32>
    %c0_10 = arith.constant 0 : index
    %c0_11 = arith.constant 0 : index
    %14 = vector.load %arg10[%c0_10, %c0_11] : memref<8x128xf32, #tpu.memory_space<vmem>>, vector<8x128xf32>
    tpu.vector_store %arg10[%c0_10, %c0_11], %13 {strides = array<i32>} : memref<8x128xf32, #tpu.memory_space<vmem>>, vector<8x128xf32>,
    %c0_i32_12 = arith.constant 0 : i32
    %15 = arith.cmpi eq, %arg1, %c0_i32_12 : i32
    %16 = arith.extui %15 : i1 to i32
    %c0_i32_13 = arith.constant 0 : i32
    %17 = arith.cmpi ne, %16, %c0_i32_13 : i32
    scf.if %17 {
      %c0_14 = arith.constant 0 : index
      %c0_15 = arith.constant 0 : index
      %18 = vector.load %arg9[%c0_14, %c0_15] : memref<8x128xf32, #tpu.memory_space<vmem>>, vector<8x128xf32>
      %cst_16 = arith.constant dense<0.000000e+00> : vector<128xf32>
      %19 = vector.multi_reduction <add>, %18, %cst_16 [0] : vector<8x128xf32> to vector<128xf32>
      %20 = vector.shape_cast %19 : vector<128xf32> to vector<1x128xf32>
      %c0_17 = arith.constant 0 : index
      %c0_18 = arith.constant 0 : index
      %21 = vector.load %arg10[%c0_17, %c0_18] : memref<8x128xf32, #tpu.memory_space<vmem>>, vector<8x128xf32>
      %cst_19 = arith.constant dense<0.000000e+00> : vector<128xf32>
      %22 = vector.multi_reduction <add>, %21, %cst_19 [0] : vector<8x128xf32> to vector<128xf32>
      %23 = vector.shape_cast %22 : vector<128xf32> to vector<1x128xf32>
      %24 = tpu.concatenate %20, %23 in 0 : vector<1x128xf32>, vector<1x128xf32> -> vector<2x128xf32>
      %c0_20 = arith.constant 0 : index
      %c0_21 = arith.constant 0 : index
      %25 = vector.load %arg3[%c0_20, %c0_21] : memref<128x32xf32, #tpu.memory_space<vmem>>, vector<128x32xf32>
      %cst_22 = arith.constant dense<0.000000e+00> : vector<2x32xf32>
      %26 = tpu.matmul %24, %25, %cst_22 {dimension_numbers = #tpu.dot_dimension_numbers<[1], [0], [0], [1], [0, 0, 1, 1], [], []>} : vector<2x128xf32>, vector<128x32xf32>, vector<2x32xf32> -> vector<2x32xf32>
      %27 = vector.extract_strided_slice %26 {offsets = [0, 0], sizes = [1, 32], strides = [1, 1]} : vector<2x32xf32> to vector<1x32xf32>
      %28 = vector.extract_strided_slice %26 {offsets = [1, 0], sizes = [1, 32], strides = [1, 1]} : vector<2x32xf32> to vector<1x32xf32>
      %29 = arith.mulf %27, %27 : vector<1x32xf32>
      %30 = arith.subf %28, %29 : vector<1x32xf32>
      %31 = tpu.concatenate %27, %30 in 0 : vector<1x32xf32>, vector<1x32xf32> -> vector<2x32xf32>
      %c0_23 = arith.constant 0 : index
      %c0_24 = arith.constant 0 : index
      %32 = vector.load %arg4[%c0_23, %c0_24] : memref<32x128xf32, #tpu.memory_space<vmem>>, vector<32x128xf32>
      %cst_25 = arith.constant dense<0.000000e+00> : vector<2x128xf32>
      %33 = tpu.matmul %31, %32, %cst_25 {dimension_numbers = #tpu.dot_dimension_numbers<[1], [0], [0], [1], [0, 0, 1, 1], [], []>} : vector<2x32xf32>, vector<32x128xf32>, vector<2x128xf32> -> vector<2x128xf32>
      %34 = vector.extract_strided_slice %33 {offsets = [1, 0], sizes = [1, 128], strides = [1, 1]} : vector<2x128xf32> to vector<1x128xf32>
      %cst_26 = arith.constant 9.99999997E-7 : f32
      %35 = vector.broadcast %cst_26 : f32 to vector<1x128xf32>
      %36 = arith.addf %34, %35 : vector<1x128xf32>
      %37 = math.rsqrt %36 : vector<1x128xf32>
      %c0_27 = arith.constant 0 : index
      %c0_28 = arith.constant 0 : index
      %38 = vector.load %arg5[%c0_27, %c0_28] : memref<1x128xf32, #tpu.memory_space<vmem>>, vector<1x128xf32>
      %39 = arith.mulf %37, %38 : vector<1x128xf32>
      %c0_29 = arith.constant 0 : index
      %c0_30 = arith.constant 0 : index
      %40 = vector.load %arg6[%c0_29, %c0_30] : memref<1x128xf32, #tpu.memory_space<vmem>>, vector<1x128xf32>
      %41 = vector.extract_strided_slice %33 {offsets = [0, 0], sizes = [1, 128], strides = [1, 1]} : vector<2x128xf32> to vector<1x128xf32>
      %42 = arith.mulf %41, %39 : vector<1x128xf32>
      %43 = arith.subf %40, %42 : vector<1x128xf32>
      %c0_31 = arith.constant 0 : index
      %c0_32 = arith.constant 0 : index
      %c0_33 = arith.constant 0 : index
      %44 = vector.load %arg7[%c0_31, %c0_32, %c0_33] : memref<1x1x128xf32, #tpu.memory_space<vmem>>, vector<1x1x128xf32>
      %45 = vector.shape_cast %44 : vector<1x1x128xf32> to vector<1x128xf32>
      %46 = vector.shape_cast %39 : vector<1x128xf32> to vector<1x1x128xf32>
      tpu.vector_store %arg7[%c0_31, %c0_32, %c0_33], %46 {strides = array<i32>} : memref<1x1x128xf32, #tpu.memory_space<vmem>>, vector<1x1x128xf32>,
      %c0_34 = arith.constant 0 : index
      %c0_35 = arith.constant 0 : index
      %c0_36 = arith.constant 0 : index
      %47 = vector.load %arg8[%c0_34, %c0_35, %c0_36] : memref<1x1x128xf32, #tpu.memory_space<vmem>>, vector<1x1x128xf32>
      %48 = vector.shape_cast %47 : vector<1x1x128xf32> to vector<1x128xf32>
      %49 = vector.shape_cast %43 : vector<1x128xf32> to vector<1x1x128xf32>
      tpu.vector_store %arg8[%c0_34, %c0_35, %c0_36], %49 {strides = array<i32>} : memref<1x1x128xf32, #tpu.memory_space<vmem>>, vector<1x1x128xf32>,
    } else {
    }
    return
  }
  func.func @transform_0(%arg0: i32, %arg1: i32) -> (i32, i32, i32) {
    %c0_i32 = arith.constant 0 : i32
    %c0_i32_0 = arith.constant 0 : i32
    return %arg0, %arg1, %c0_i32 : i32, i32, i32
  }
  func.func @transform_1(%arg0: i32, %arg1: i32) -> (i32, i32) {
    %c0_i32 = arith.constant 0 : i32
    %c0_i32_0 = arith.constant 0 : i32
    %c0_i32_1 = arith.constant 0 : i32
    return %c0_i32, %c0_i32_0 : i32, i32
  }
  func.func @transform_2(%arg0: i32, %arg1: i32) -> (i32, i32) {
    %c0_i32 = arith.constant 0 : i32
    %c0_i32_0 = arith.constant 0 : i32
    %c0_i32_1 = arith.constant 0 : i32
    return %c0_i32, %c0_i32_0 : i32, i32
  }
  func.func @transform_3(%arg0: i32, %arg1: i32) -> (i32, i32) {
    %c0_i32 = arith.constant 0 : i32
    %c0_i32_0 = arith.constant 0 : i32
    %c0_i32_1 = arith.constant 0 : i32
    return %c0_i32, %c0_i32_0 : i32, i32
  }
  func.func @transform_4(%arg0: i32, %arg1: i32) -> (i32, i32) {
    %c0_i32 = arith.constant 0 : i32
    %c0_i32_0 = arith.constant 0 : i32
    %c0_i32_1 = arith.constant 0 : i32
    return %c0_i32, %c0_i32_0 : i32, i32
  }
  func.func @transform_5(%arg0: i32, %arg1: i32) -> (i32, i32, i32) {
    %c0_i32 = arith.constant 0 : i32
    %c0_i32_0 = arith.constant 0 : i32
    %c0_i32_1 = arith.constant 0 : i32
    return %arg0, %c0_i32, %c0_i32_0 : i32, i32, i32
  }
  func.func @transform_6(%arg0: i32, %arg1: i32) -> (i32, i32, i32) {
    %c0_i32 = arith.constant 0 : i32
    %c0_i32_0 = arith.constant 0 : i32
    %c0_i32_1 = arith.constant 0 : i32
    return %arg0, %c0_i32, %c0_i32_0 : i32, i32, i32
  }
}

</mosaic_0001>

<bundles_post_ra>
// kernel: tpu_custom_call.1
= control target key start
LH: loop header
LB: loop body
LE: loop exit
PB: predicated region body
PF: predicated region fallthrough
CT: control target
= control target key end

     0   :  { %s1812_s0 = inlined_call_operand.hbm [shape: f32[2,256,128], index: 0, kind: input, shape index: {}]   ;;  %s1813_s1 = inlined_call_operand.hbm [shape: f32[128,32], index: 1, kind: input, shape index: {}]   ;;  %s1814_s2 = inlined_call_operand.hbm [shape: f32[32,128], index: 2, kind: input, shape index: {}]   ;;  %s1815_s3 = inlined_call_operand.hbm [shape: f32[1,128], index: 3, kind: input, shape index: {}]   ;;  %s1816_s4 = inlined_call_operand.hbm [shape: f32[1,128], index: 4, kind: input, shape index: {}]   ;;  %s1817_s5 = inlined_call_operand.hbm [shape: f32[2,1,128], index: 5, kind: output, shape index: {0}]   ;;  %s1818_s6 = inlined_call_operand.hbm [shape: f32[2,1,128], index: 6, kind: output, shape index: {1}]  }
   0x1   :  { %1826 = sst [smem:[#allocation23_spill]] %s1818_s6 }
   0x2   :  { %12 = vsyncpa [#allocation5], 0 }
   0x3   :  { %14 = vsyncpa [#allocation5 + $0x1], 0 }
   0x4   :  { %15 = vsyncpa [#allocation8], 0 }
   0x5   :  { %16 = vsyncpa [#allocation11], 0 }
   0x6   :  { %17 = vsyncpa [#allocation6], 0 }
   0x7   :  { %19 = vsyncpa [#allocation6 + $0x1], 0 }
   0x8   :  { %20 = vsyncpa [#allocation15], 0 }
   0x9   :  { %22 = vsyncpa [#allocation15 + $0x1], 0  ;;  %s1418_s21 = smov 0   ;;  %s1420_s22 = smov 0  }
   0xa   :  { %s1422_s23 = smov 0   ;;  %s1424_s24 = smov 0  }
   0xb   :  { %s1426_s25 = smov 0   ;;  %s1428_s26 = smov 0  }
   0xc LB: > { %1827 = sst [smem:[#allocation21_spill]] %s1349_s21  ;;  %s868_s27 = sadd.s32 4294967295, %s1369_s26   ;;  %s1369_s26 = sphi %s1428_s26, %s28_s26   ;;  %s1365_s25 = sphi %s1426_s25, %s1851_s25   ;;  %s1361_s24 = sphi %s1424_s24, %s1850_s24   ;;  %s1357_s23 = sphi %s1422_s23, %s1849_s23   ;;  %s1353_s22 = sphi %s1420_s22, %s1848_s22   ;;  %s1349_s21 = sphi %s1418_s21, %s1847_s21  }
   0xd   : > { %s869_s28 = sadd.s32 4294967294, %s1369_s26   ;;  %p62_p0 = scmp.ne.s32.totalorder %s1353_s22, %s1349_s21 }
   0xe   : > { %p1452_p1 = scmp.eq.s32.totalorder %s868_s27, 0  ;;  %p1456_p2 = scmp.eq.s32.totalorder %s868_s27, 1 }
   0xf   : > { %p176_p3 = scmp.eq.s32.totalorder %s869_s28, 1  ;;  %p870_p5 = scmp.ge.s32.totalorder %s1369_s26, 1 }
  0x10   : > { %s1828_s29 = scalar_select %p1452_p1, 1, 0 }
  0x11   : > { %s1829_s30 = scalar_select %p1456_p2, 1, 0 }
  0x12   : > { %p1462_p4 = por %p1452_p1, %p62_p0  ;;  %p1467_p6 = por %p176_p3, %p62_p0 }
  0x13   : > { %p209_p7 = scmp.lt.s32.totalorder %s1369_s26, 3  ;;  %s1371_s10 = smov [#allocation7]  }
  0x14   : > { %s1830_s7 = scalar_select %p1462_p4, 1, 0 }
  0x15   : > { %s1831_s8 = scalar_select %p1467_p6, 1, 0 }
  0x16   : > { %p1472_p8 = pnand %p870_p5, %p209_p7  ;;  %s221_s11 = sshll.u32 %s1371_s10, 4  ;;  %s1476_s11 = int_to_ptr.vmem [resolvable:$true] %s221_s11 }
  0x17   : > { %1832 = sst [smem:[#allocation22_spill]] %s1831_s8  ;;  %s1372_s13 = smov [#allocation10]  }
  0x18   : > { %s1833_s9 = scalar_select %p1472_p8, 1, 0 }
  0x19   : > { %p1012_p9 = pneg %p1472_p8  ;;  %s248_s14 = sshll.u32 %s1372_s13, 4  ;;  %s1487_s14 = int_to_ptr.vmem [resolvable:$true] %s248_s14 }
  0x1a   : > { %s1373_s15 = smov [#allocation9]   ;;  %s1105_s19 = scalar_lea.hbm %s1813_s1, 2048 }
  0x1b   : > { %p1483_p11 = pnand %p1012_p9, %p1452_p1  ;;  %s1489_s16 = sshll.u32 %s1373_s15, 4  ;;  %s235_s16 = int_to_ptr.vmem [resolvable:$true] %s1489_s16 }
  0x1c   : > { %p1106_p12 = scmp.ne.s32.totalorder %s1813_s1, %s1105_s19  ;;  %p1112_p5 = scmp.lt.u32.totalorder %s1105_s19, %s1813_s1 }
  0x1d   : > { %p1499_p13 = pneg %p1483_p11 }
  0x1f   : > { %p1108_p0 = pnand %p1499_p13, %p1106_p12 }
  0x21   : > { %p1109_p3 = pneg %p1108_p0 }
  0x23   : > { %p1114_p7 = pnand %p1112_p5, %p1109_p3 }
  0x25   : > { %1117 = shalt.err (!%p1114_p7)
}
  0x26   : > { %s1118_s15 = scalar_lea.vmem %s1476_s11, 2048  ;;  %p1126_p1 = scmp.lt.s32.totalorder %s1476_s11, %s1476_s11 }
  0x27   : > { %p1119_p9 = scmp.ne.s32.totalorder %s1476_s11, %s1118_s15  ;;  %p1127_p4 = scmp.lt.s32.totalorder %s1118_s15, %s1118_s15 }
  0x29   : > { %p1121_p10 = pnand %p1119_p9, %p1499_p13  ;;  %p1128_p12 = por %p1127_p4, %p1126_p1 }
  0x2b   : > { %p1122_p6 = pneg %p1121_p10 }
  0x2d   : > { %p1129_p0 = pnand %p1128_p12, %p1122_p6 }
  0x2f   : > { %1132 = shalt.err (!%p1129_p0)
}
  0x30   : > { %s1374_s17 = smov 128   ;;  %s1375_s18 = smov 8  }
  0x31   : > { %1015 = dma.hbm_to_vmem [thread:$0]  (!%p1483_p11), %s1813_s1, 2048, %s1476_s11, [#allocation8], %s1374_s17, %s1374_s17, %s1375_s18  }
  0x32   : > { %s1133_s13 = scalar_lea.hbm %s1815_s3, 16 }
  0x33   : > { %p1134_p1 = scmp.ne.s32.totalorder %s1815_s3, %s1133_s13  ;;  %p1140_p10 = scmp.lt.u32.totalorder %s1133_s13, %s1815_s3 }
  0x35   : > { %p1136_p4 = pnand %p1134_p1, %p1499_p13 }
  0x37   : > { %p1137_p6 = pneg %p1136_p4 }
  0x39   : > { %p1142_p3 = pnand %p1140_p10, %p1137_p6 }
  0x3b   : > { %1145 = shalt.err (!%p1142_p3)
}
  0x3c   : > { %s1146_s11 = scalar_lea.vmem %s1487_s14, 16  ;;  %s1153_s8 = scalar_lea.vmem %s1487_s14, 32 }
  0x3d   : > { %p1147_p5 = scmp.ne.s32.totalorder %s1487_s14, %s1146_s11  ;;  %p1154_p12 = scmp.lt.s32.totalorder %s1487_s14, %s1487_s14 }
  0x3e   : > { %p1155_p0 = scmp.lt.s32.totalorder %s1153_s8, %s1146_s11 }
  0x3f   : > { %p1149_p7 = pnand %p1147_p5, %p1499_p13 }
  0x40   : > { %p1156_p1 = por %p1155_p0, %p1154_p12 }
  0x41   : > { %p1150_p9 = pneg %p1149_p7 }
  0x43   : > { %p1157_p4 = pnand %p1156_p1, %p1150_p9 }
  0x45   : > { %1160 = shalt.err (!%p1157_p4)
}
  0x46   : > { %1021 = dma.hbm_to_vmem [thread:$0]  (!%p1483_p11), %s1815_s3, 16, %s1487_s14, [#allocation11]  }
  0x47   : > { %s1161_s27 = scalar_lea.hbm %s1814_s2, 512 }
  0x48   : > { %p1162_p6 = scmp.ne.s32.totalorder %s1814_s2, %s1161_s27  ;;  %p1168_p5 = scmp.lt.u32.totalorder %s1161_s27, %s1814_s2 }
  0x4a   : > { %p1164_p10 = pnand %p1162_p6, %p1499_p13 }
  0x4c   : > { %p1165_p3 = pneg %p1164_p10 }
  0x4e   : > { %p1170_p7 = pnand %p1168_p5, %p1165_p3 }
  0x50   : > { %1173 = shalt.err (!%p1170_p7)
}
  0x51   : > { %s1174_s8 = scalar_lea.vmem %s235_s16, 512  ;;  %p1182_p1 = scmp.lt.s32.totalorder %s235_s16, %s235_s16 }
  0x52   : > { %p1175_p9 = scmp.ne.s32.totalorder %s235_s16, %s1174_s8  ;;  %p1183_p4 = scmp.lt.s32.totalorder %s1174_s8, %s1174_s8 }
  0x54   : > { %p1177_p12 = pnand %p1175_p9, %p1499_p13  ;;  %p1184_p8 = por %p1183_p4, %p1182_p1 }
  0x56   : > { %p1178_p0 = pneg %p1177_p12 }
  0x58   : > { %p1185_p2 = pnand %p1184_p8, %p1178_p0 }
  0x5a   : > { %1188 = shalt.err (!%p1185_p2)
}
  0x5b   : > { %1018 = dma.hbm_to_vmem [thread:$0]  (!%p1483_p11), %s1814_s2, 512, %s235_s16, [#allocation8], %s1374_s17, %s1374_s17, %s1375_s18  }
  0x5c   : > { %s1376_s21 = smov [#allocation12]   ;;  %s1189_s10 = scalar_lea.hbm %s1816_s4, 16 }
  0x5d   : > { %s259_s19 = sshll.u32 %s1376_s21, 4  ;;  %p1190_p2 = scmp.ne.s32.totalorder %s1816_s4, %s1189_s10  ;;  %s260_s19 = int_to_ptr.vmem [resolvable:$true] %s259_s19 }
  0x5e   : > { %p1196_p10 = scmp.lt.u32.totalorder %s1189_s10, %s1816_s4 }
  0x5f   : > { %p1192_p8 = pnand %p1190_p2, %p1499_p13 }
  0x61   : > { %p1193_p6 = pneg %p1192_p8 }
  0x63   : > { %p1198_p3 = pnand %p1196_p10, %p1193_p6 }
  0x65   : > { %1201 = shalt.err (!%p1198_p3)
}
  0x66   : > { %s1202_s16 = scalar_lea.vmem %s260_s19, 16  ;;  %s1209_s14 = scalar_lea.vmem %s260_s19, 32 }
  0x67   : > { %p1203_p5 = scmp.ne.s32.totalorder %s260_s19, %s1202_s16  ;;  %p1210_p12 = scmp.lt.s32.totalorder %s260_s19, %s260_s19 }
  0x68   : > { %p1211_p0 = scmp.lt.s32.totalorder %s1209_s14, %s1202_s16 }
  0x69   : > { %p1205_p7 = pnand %p1203_p5, %p1499_p13 }
  0x6a   : > { %p1212_p1 = por %p1211_p0, %p1210_p12 }
  0x6b   : > { %p1206_p9 = pneg %p1205_p7 }
  0x6d   : > { %p1213_p4 = pnand %p1212_p1, %p1206_p9 }
  0x6f   : > { %1216 = shalt.err (!%p1213_p4)
}
  0x70   : > { %1024 = dma.hbm_to_vmem [thread:$0]  (!%p1483_p11), %s1816_s4, 16, %s260_s19, [#allocation11]  }
  0x71   : > { %s40_s28 = sadd.s32 1, %s1365_s25  ;;  %s49_s20 = sadd.s32 1, %s1357_s23 }
  0x72   : > { %p42_p13 = scmp.ge.s32.totalorder %s40_s28, 2  ;;  %p56_p2 = scmp.ne.s32.totalorder %s1357_s23, %s1353_s22 }
  0x73   : > { %p57_p8 = scmp.eq.s32.totalorder %s1369_s26, 0  ;;  %p1040_p6 = scmp.lt.s32.totalorder %s1369_s26, 2 }
  0x74   : > { %s1853_s28 = smov (%p42_p13, %s40_s28), 0  ;;  %p1836_p3 = scmp.ne.s32.totalorder %s1829_s30, 0 }
  0x75   : > { %p58_p10 = por %p57_p8, %p56_p2  ;;  %s44_s27 = ssub.s32 %s1365_s25, %s1853_s28 }
  0x76   : > { %p1597_p5 = por %p1836_p3, %p56_p2  ;;  %s270_s10 = sand.u32 1, %s1357_s23  }
  0x77   : > { %p47_p7 = scmp.eq.s32.totalorder %s44_s27, 0  ;;  %s876_s19 = sshll.u32 %s270_s10, 8 }
  0x78   : > { %s891_s13 = sshll.u32 %s1365_s25, 12  ;;  %s274_s30 = scalar_lea.vmem [#allocation4], %s876_s19 }
  0x79   : > { %s1606_s15 = scalar_select %p47_p7, %s1357_s23, %s49_s20  }
  0x7a   : > { %s1611_s16 = scalar_lea.hbm %s1812_s0, %s891_s13  ;;  %s283_s14 = sshll.u32 %s274_s30, 4  ;;  %s1619_s14 = int_to_ptr.vmem [resolvable:$true] %s283_s14 }
  0x7b   : > { %p1615_p11 = pnand %p1040_p6, %p58_p10  ;;  %s1621_s21 = scalar_lea.sflag [#allocation5], %s270_s10 }
  0x7c   : > { %s1217_s20 = scalar_lea.hbm %s1611_s16, 4096  ;;  %s1222_s13 = scalar_lea.hbm %s1812_s0, 8192 }
  0x7d   : > { %p1218_p9 = scmp.ne.s32.totalorder %s1611_s16, %s1217_s20  ;;  %p1219_p12 = pneg %p1615_p11 }
  0x7e   : > { %p1223_p4 = scmp.lt.u32.totalorder %s1611_s16, %s1812_s0  ;;  %p1224_p13 = scmp.lt.u32.totalorder %s1222_s13, %s1217_s20 }
  0x7f   : > { %p1220_p0 = pnand %p1219_p12, %p1218_p9  ;;  %p1226_p8 = scmp.lt.u32.totalorder %s1217_s20, %s1611_s16 }
  0x80   : > { %p1225_p2 = por %p1224_p13, %p1223_p4 }
  0x81   : > { %p1221_p1 = pneg %p1220_p0 }
  0x82   : > { %p1227_p6 = por %p1226_p8, %p1225_p2 }
  0x84   : > { %p1228_p10 = pnand %p1227_p6, %p1221_p1 }
  0x86   : > { %1231 = shalt.err (!%p1228_p10)
}
  0x87   : > { %s1232_s10 = scalar_lea.vmem %s1619_s14, 4096  ;;  %s1377_s30 = smov [#allocation4]  }
  0x88   : > { %p1233_p3 = scmp.ne.s32.totalorder %s1619_s14, %s1232_s10  ;;  %s1237_s27 = sshll.u32 %s1377_s30, 4  ;;  %s1238_s27 = int_to_ptr.vmem [resolvable:$false] %s1237_s27 }
  0x89   : > { %s1239_s19 = scalar_lea.vmem %s1238_s27, 8192  ;;  %p1240_p0 = scmp.lt.s32.totalorder %s1619_s14, %s1238_s27 }
  0x8a   : > { %p1235_p7 = pnand %p1233_p3, %p1219_p12  ;;  %p1241_p4 = scmp.lt.s32.totalorder %s1239_s19, %s1232_s10 }
  0x8c   : > { %p1236_p9 = pneg %p1235_p7  ;;  %p1242_p13 = por %p1241_p4, %p1240_p0 }
  0x8e   : > { %p1243_p2 = pnand %p1242_p13, %p1236_p9 }
  0x90   : > { %1246 = shalt.err (!%p1243_p2)
}
  0x91   : > { %1028 = dma.hbm_to_vmem [thread:$0]  (!%p1615_p11), %s1611_s16, 4096, %s1619_s14, %s1621_s21, %s1374_s17, %s1374_s17, %s1375_s18  }
  0x92   : > { %p1839_p12 = scmp.ne.s32.totalorder %s1833_s9, 0 }
  0x93   : > { %s1655_s20 = sand.u32 (!%p1839_p12), 1, %s1353_s22   ;;  %p1840_p1 = scmp.ne.s32.totalorder (!%p1839_p12), %s1830_s7, 0 }
  0x94   : > { %295 = sbr.rel (%p1839_p12) target bundleno = 726 (0x2d6), region = 40  ;;  %s880_s13 = sshll.u32 (!%p1839_p12), %s1655_s20, 8 }
  0x95   : > { %s298_s11 = scalar_lea.sflag (!%p1839_p12), [#allocation5], %s1655_s20  ;;  %s1659_s8 = scalar_lea.vmem (!%p1839_p12), [#allocation4], %s880_s13 }
  0x9b   : > { %1328 = dma.done.wait (%p1840_p1), %s298_s11, 4096  }
  0x9c   : > { %1330 = vsyncadd (%p1840_p1), %s298_s11, 4294963200  ;;  %p1841_p11 = scmp.ne.s32.totalorder %s1828_s29, 0 }
  0x9e   : > { %1332 = dma.done.wait (%p1841_p11), [#allocation8], 2560  }
  0x9f   : > { %1334 = vsyncadd (%p1841_p11), [#allocation8], 4294964736 }
  0xa0   : > { %1336 = dma.done.wait (%p1841_p11), [#allocation11], 32  }
  0xa1   : > { %1338 = vsyncadd (%p1841_p11), [#allocation11], 4294967264  ;;  %v1378_v0 = vmov 0.0|0.0   ;;  %vm1379_vm0 = vmmov 0   ;;  %v1380_v1 = vmov 0.0   ;;  %v507_v2 = vld [vmem:[#allocation7] sm:$0xff] }
  0xa2   : > { %960 = vmatprep.subr.bf16.mxu0 %v1378_v0  ;;  %946 = vmatprep.mubr.msk.f32.mxu0 %vm1379_vm0, %v1380_v1  ;;  %v508_v3 = vld [vmem:[#allocation7 + $0x8] sm:$0xff]  ;;  %v509_v4 = vld [vmem:[#allocation7 + $0x10] sm:$0xff]  ;;  %v510_v6 = vld [vmem:[#allocation7 + $0x18] sm:$0xff]  ;;  %vm505_vm1 = vcmask 1040384   ;;  %vm603_vm2 = vcmask 261120   ;;  %s887_s29 = sshll.u32 %s1361_s24, 4 }
  0xa3   : > { %984 = vmatprep.subr.bf16.mxu1 %v1378_v0  ;;  %957 = vmatprep.mubr.msk.f32.mxu1 %vm1379_vm0, %v1380_v1  ;;  %v961_v5 = vpack.c.bf16 %v508_v3, %v507_v2  ;;  %v964_v7 = vpack.c.bf16 %v510_v6, %v509_v4  ;;  %v511_v8 = vld [vmem:[#allocation7 + $0x20] sm:$0xff]  ;;  %v512_v9 = vld [vmem:[#allocation7 + $0x28] sm:$0xff]  ;;  %v358_v12 = vld [vmem:[%s1659_s8 + $0x10] sm:$0xff]  ;;  %s342_s7 = scalar_lea.vmem [#allocation13], %s1655_s20  ;;  %s1724_s16 = scalar_lea.hbm %s1817_s5, %s887_s29 }
  0xa4   : > { %v356_v10 = vld [vmem:[%s1659_s8] sm:$0xff]  ;;  %v357_v11 = vld [vmem:[%s1659_s8 + $0x8] sm:$0xff]  ;;  %v359_v13 = vld [vmem:[%s1659_s8 + $0x18] sm:$0xff]  ;;  %v967_v17 = vpack.c.bf16 %v512_v9, %v511_v8  ;;  %v425_v18 = vmul.f32 %v358_v12, %v358_v12  ;;  %s712_s9 = sshll.u32 %s342_s7, 4  ;;  %s348_s14 = scalar_lea.vmem [#allocation14], %s1655_s20  ;;  %s1726_s9 = int_to_ptr.vmem [resolvable:$true] %s712_s9 }
  0xa5   : > { %962 = vmatpush3.bf16.msra.mxu0 %v961_v5  ;;  %v389_v14 = vadd.f32 %v357_v11, %v356_v10  ;;  %v423_v15 = vmul.f32 %v356_v10, %v356_v10  ;;  %v424_v16 = vmul.f32 %v357_v11, %v357_v11  ;;  %v513_v19 = vld [vmem:[#allocation7 + $0x30] sm:$0xff]  ;;  %v514_v20 = vld [vmem:[#allocation7 + $0x38] sm:$0xff]  ;;  %v360_v21 = vld [vmem:[%s1659_s8 + $0x20] sm:$0xff]  ;;  %v426_v23 = vmul.f32 %v359_v13, %v359_v13  ;;  %s1731_s6 = sshll.u32 %s348_s14, 4  ;;  %s696_s21 = scalar_lea.sflag [#allocation6], %s1655_s20  ;;  %s1763_s6 = int_to_ptr.vmem [resolvable:$true] %s1731_s6 }
  0xa6   : > { %963 = vmatprep.subr.bf16.mxu0 %v1378_v0  ;;  %v361_v25 = vld [vmem:[%s1659_s8 + $0x28] sm:$0xff]  ;;  %v970_v27 = vpack.c.bf16 %v514_v20, %v513_v19  ;;  %v427_v28 = vmul.f32 %v360_v21, %v360_v21  ;;  %v515_v30 = vld [vmem:[#allocation7 + $0x40] sm:$0xff]  ;;  %v362_v32 = vld [vmem:[%s1659_s8 + $0x30] sm:$0xff]  ;;  %s1247_s10 = scalar_lea.vmem %s1726_s9, 16  ;;  %s1381_s30 = smov [#allocation13]  }
  0xa7   : > { %v390_v22 = vadd.f32 %v389_v14, %v358_v12  ;;  %v455_v24 = vadd.f32 %v424_v16, %v423_v15  ;;  %v516_v31 = vld [vmem:[#allocation7 + $0x48] sm:$0xff]  ;;  %v428_v34 = vmul.f32 %v361_v25, %v361_v25  ;;  %v363_v36 = vld [vmem:[%s1659_s8 + $0x38] sm:$0xff]  ;;  %v429_v39 = vmul.f32 %v362_v32, %v362_v32  ;;  %v517_v41 = vld [vmem:[#allocation7 + $0x50] sm:$0xff]  ;;  %p1248_p8 = scmp.ne.s32.totalorder %s1726_s9, %s1247_s10  ;;  %s1251_s27 = sshll.u32 %s1381_s30, 4  ;;  %s1252_s27 = int_to_ptr.vmem [resolvable:$false] %s1251_s27 }
  0xa8   : > { %v973_v38 = vpack.c.bf16 %v516_v31, %v515_v30  ;;  %v518_v42 = vld [vmem:[#allocation7 + $0x58] sm:$0xff]  ;;  %v364_v43 = vld [vmem:[%s1659_s8 + $0x40] sm:$0xff]  ;;  %v430_v45 = vmul.f32 %v363_v36, %v363_v36  ;;  %v365_v47 = vld [vmem:[%s1659_s8 + $0x48] sm:$0xff]  ;;  %s1253_s19 = scalar_lea.vmem %s1252_s27, 32  ;;  %p1254_p3 = scmp.lt.s32.totalorder %s1726_s9, %s1252_s27 }
  0xa9   : > { %965 = vmatpush3.bf16.msra.mxu0 %v964_v7  ;;  %v391_v26 = vadd.f32 %v390_v22, %v359_v13  ;;  %v456_v29 = vadd.f32 %v455_v24, %v425_v18  ;;  %v976_v49 = vpack.c.bf16 %v518_v42, %v517_v41  ;;  %v431_v50 = vmul.f32 %v364_v43, %v364_v43  ;;  %v519_v52 = vld [vmem:[#allocation7 + $0x60] sm:$0xff]  ;;  %v520_v53 = vld [vmem:[#allocation7 + $0x68] sm:$0xff]  ;;  %v366_v54 = vld [vmem:[%s1659_s8 + $0x50] sm:$0xff]  ;;  %p1249_p6 = pnand %p1248_p8, %p1597_p5  ;;  %p1255_p7 = scmp.lt.s32.totalorder %s1253_s19, %s1247_s10 }
  0xaa   : > { %966 = vmatprep.subr.bf16.mxu0 %v1378_v0  ;;  %v432_v56 = vmul.f32 %v365_v47, %v365_v47  ;;  %v367_v58 = vld [vmem:[%s1659_s8 + $0x58] sm:$0xff]  ;;  %v979_v60 = vpack.c.bf16 %v520_v53, %v519_v52  ;;  %v433_v61 = vmul.f32 %v366_v54, %v366_v54  ;;  %v521_v63 = vld [vmem:[#allocation7 + $0x70] sm:$0xff]  ;;  %v368_v2 = vld [vmem:[%s1659_s8 + $0x60] sm:$0xff] }
  0xab   : > { %v392_v33 = vadd.f32 %v391_v26, %v360_v21  ;;  %v457_v35 = vadd.f32 %v456_v29, %v426_v23  ;;  %v522_v1 = vld [vmem:[#allocation7 + $0x78] sm:$0xff]  ;;  %v434_v4 = vmul.f32 %v367_v58, %v367_v58  ;;  %v369_v6 = vld [vmem:[%s1659_s8 + $0x68] sm:$0xff]  ;;  %v435_v9 = vmul.f32 %v368_v2, %v368_v2  ;;  %v370_v11 = vld [vmem:[%s1659_s8 + $0x70] sm:$0xff]  ;;  %p1250_p10 = pneg %p1249_p6  ;;  %p1256_p9 = por %p1255_p7, %p1254_p3 }
  0xac   : > { %v982_v8 = vpack.c.bf16 %v522_v1, %v521_v63  ;;  %v436_v13 = vmul.f32 %v369_v6, %v369_v6  ;;  %v371_v15 = vld [vmem:[%s1659_s8 + $0x78] sm:$0xff]  ;;  %v372_v19 = vld [vmem:[%s1659_s8 + $0x80] sm:$0xff]  ;;  %v373_v23 = vld [vmem:[%s1659_s8 + $0x88] sm:$0xff] }
  0xad   : > { %968 = vmatpush3.bf16.msra.mxu0 %v967_v17  ;;  %v393_v37 = vadd.f32 %v392_v33, %v361_v25  ;;  %v458_v40 = vadd.f32 %v457_v35, %v427_v28  ;;  %v437_v17 = vmul.f32 %v370_v11, %v370_v11  ;;  %v438_v21 = vmul.f32 %v371_v15, %v371_v15  ;;  %v375_v31 = vld [vmem:[%s1659_s8 + $0x98] sm:$0xff]  ;;  %v376_v35 = vld [vmem:[%s1659_s8 + $0xa0] sm:$0xff]  ;;  %p1257_p0 = pnand %p1256_p9, %p1250_p10 }
  0xae   : > { %969 = vmatprep.subr.bf16.mxu0 %v1378_v0  ;;  %v439_v25 = vmul.f32 %v372_v19, %v372_v19  ;;  %v440_v29 = vmul.f32 %v373_v23, %v373_v23  ;;  %v443_v41 = vmul.f32 %v376_v35, %v376_v35  ;;  %v383_v63 = vld [vmem:[%s1659_s8 + $0xd8] sm:$0xff] }
  0xaf   : > { %v394_v44 = vadd.f32 %v393_v37, %v362_v32  ;;  %v459_v46 = vadd.f32 %v458_v40, %v428_v34  ;;  %v442_v37 = vmul.f32 %v375_v31, %v375_v31 }
  0xb1   : > { %971 = vmatpush3.bf16.msra.mxu0 %v970_v27  ;;  %v395_v48 = vadd.f32 %v394_v44, %v363_v36  ;;  %v460_v51 = vadd.f32 %v459_v46, %v429_v39  ;;  %v374_v27 = vld [vmem:[%s1659_s8 + $0x90] sm:$0xff]  ;;  %v377_v39 = vld [vmem:[%s1659_s8 + $0xa8] sm:$0xff] }
  0xb2   : > { %972 = vmatprep.subr.bf16.mxu0 %v1378_v0  ;;  %v441_v33 = vmul.f32 %v374_v27, %v374_v27 }
  0xb3   : > { %v396_v55 = vadd.f32 %v395_v48, %v364_v43  ;;  %v461_v57 = vadd.f32 %v460_v51, %v430_v45  ;;  %v378_v43 = vld [vmem:[%s1659_s8 + $0xb0] sm:$0xff]  ;;  %v444_v45 = vmul.f32 %v377_v39, %v377_v39  ;;  %v380_v51 = vld [vmem:[%s1659_s8 + $0xc0] sm:$0xff] }
  0xb5   : > { %974 = vmatpush3.bf16.msra.mxu0 %v973_v38  ;;  %v397_v59 = vadd.f32 %v396_v55, %v365_v47  ;;  %v462_v62 = vadd.f32 %v461_v57, %v431_v50  ;;  %v379_v47 = vld [vmem:[%s1659_s8 + $0xb8] sm:$0xff]  ;;  %v381_v55 = vld [vmem:[%s1659_s8 + $0xc8] sm:$0xff]  ;;  %v447_v57 = vmul.f32 %v380_v51, %v380_v51 }
  0xb6   : > { %975 = vmatprep.subr.bf16.mxu0 %v1378_v0  ;;  %v446_v53 = vmul.f32 %v379_v47, %v379_v47 }
  0xb7   : > { %v398_v3 = vadd.f32 %v397_v59, %v366_v54  ;;  %v463_v5 = vadd.f32 %v462_v62, %v432_v56  ;;  %v382_v59 = vld [vmem:[%s1659_s8 + $0xd0] sm:$0xff] }
  0xb9   : > { %977 = vmatpush3.bf16.msra.mxu0 %v976_v49  ;;  %v399_v7 = vadd.f32 %v398_v3, %v367_v58  ;;  %v464_v10 = vadd.f32 %v463_v5, %v433_v61  ;;  %v445_v49 = vmul.f32 %v378_v43, %v378_v43  ;;  %v448_v61 = vmul.f32 %v381_v55, %v381_v55 }
  0xba   : > { %978 = vmatprep.subr.bf16.mxu0 %v1378_v0 }
  0xbb   : > { %v400_v12 = vadd.f32 %v399_v7, %v368_v2  ;;  %v465_v14 = vadd.f32 %v464_v10, %v434_v4  ;;  %v449_v2 = vmul.f32 %v382_v59, %v382_v59  ;;  %v384_v4 = vld [vmem:[%s1659_s8 + $0xe0] sm:$0xff] }
  0xbc   : > { %v451_v10 = vmul.f32 %v384_v4, %v384_v4 }
  0xbd   : > { %980 = vmatpush3.bf16.msra.mxu0 %v979_v60  ;;  %v401_v16 = vadd.f32 %v400_v12, %v369_v6  ;;  %v466_v18 = vadd.f32 %v465_v14, %v435_v9  ;;  %v450_v6 = vmul.f32 %v383_v63, %v383_v63  ;;  %v386_v12 = vld [vmem:[%s1659_s8 + $0xf0] sm:$0xff] }
  0xbe   : > { %981 = vmatprep.subr.bf16.mxu0 %v1378_v0 }
  0xbf   : > { %v402_v20 = vadd.f32 %v401_v16, %v370_v11  ;;  %v467_v22 = vadd.f32 %v466_v18, %v436_v13  ;;  %v387_v16 = vld [vmem:[%s1659_s8 + $0xf8] sm:$0xff]  ;;  %v453_v18 = vmul.f32 %v386_v12, %v386_v12 }
  0xc1   : > { %983 = vmatpush3.bf16.msra.mxu0 %v982_v8  ;;  %v403_v24 = vadd.f32 %v402_v20, %v371_v15  ;;  %v468_v26 = vadd.f32 %v467_v22, %v437_v17  ;;  %v385_v8 = vld [vmem:[%s1659_s8 + $0xe8] sm:$0xff] }
  0xc2   : > { %v452_v14 = vmul.f32 %v385_v8, %v385_v8 }
  0xc3   : > { %v404_v28 = vadd.f32 %v403_v24, %v372_v19  ;;  %v469_v30 = vadd.f32 %v468_v26, %v438_v21  ;;  %v454_v21 = vmul.f32 %v387_v16, %v387_v16 }
  0xc5   : > { %v405_v32 = vadd.f32 %v404_v28, %v373_v23  ;;  %v470_v34 = vadd.f32 %v469_v30, %v439_v25 }
  0xc7   : > { %v406_v36 = vadd.f32 %v405_v32, %v374_v27  ;;  %v471_v38 = vadd.f32 %v470_v34, %v440_v29 }
  0xc9   : > { %v407_v40 = vadd.f32 %v406_v36, %v375_v31  ;;  %v472_v42 = vadd.f32 %v471_v38, %v441_v33 }
  0xcb   : > { %v408_v44 = vadd.f32 %v407_v40, %v376_v35  ;;  %v473_v46 = vadd.f32 %v472_v42, %v442_v37  ;;  %v600_v40 = vld [vmem:[#allocation9 + $0x8] sm:$0xff]  ;;  %v601_v42 = vld [vmem:[#allocation9 + $0x10] sm:$0xff] }
  0xcd   : > { %v409_v48 = vadd.f32 %v408_v44, %v377_v39  ;;  %v474_v50 = vadd.f32 %v473_v46, %v443_v41  ;;  %v599_v39 = vld [vmem:[#allocation9] sm:$0xff] }
  0xce   : > { %v985_v41 = vpack.c.bf16 %v600_v40, %v599_v39 }
  0xcf   : > { %v410_v52 = vadd.f32 %v409_v48, %v378_v43  ;;  %v475_v54 = vadd.f32 %v474_v50, %v444_v45  ;;  %v602_v43 = vld [vmem:[#allocation9 + $0x18] sm:$0xff] }
  0xd0   : > { %986 = vmatpush3.bf16.msra.mxu1 %v985_v41  ;;  %v988_v44 = vpack.c.bf16 %v602_v43, %v601_v42 }
  0xd1   : > { %v411_v56 = vadd.f32 %v410_v52, %v379_v47  ;;  %v476_v58 = vadd.f32 %v475_v54, %v445_v49  ;;  %987 = vmatprep.subr.bf16.mxu1 %v1378_v0 }
  0xd3   : > { %v412_v60 = vadd.f32 %v411_v56, %v380_v51  ;;  %v477_v62 = vadd.f32 %v476_v58, %v446_v53  ;;  %v886_v53 = vld [vmem:[#allocation10] ss:$0 sm:$0xff] }
  0xd4   : > { %989 = vmatpush3.bf16.msra.mxu1 %v988_v44 }
  0xd5   : > { %v413_v1 = vadd.f32 %v412_v60, %v381_v55  ;;  %v478_v3 = vadd.f32 %v477_v62, %v447_v57  ;;  %v687_v57 = vld [vmem:[#allocation12] sm:$0x1] }
  0xd7   : > { %v414_v5 = vadd.f32 %v413_v1, %v382_v59  ;;  %v479_v7 = vadd.f32 %v478_v3, %v448_v61 }
  0xd9   : > { %v415_v9 = vadd.f32 %v414_v5, %v383_v63  ;;  %v480_v11 = vadd.f32 %v479_v7, %v449_v2 }
  0xdb   : > { %v416_v13 = vadd.f32 %v415_v9, %v384_v4  ;;  %v481_v15 = vadd.f32 %v480_v11, %v450_v6 }
  0xdd   : > { %v417_v17 = vadd.f32 %v416_v13, %v385_v8  ;;  %v482_v19 = vadd.f32 %v481_v15, %v451_v10 }
  0xdf   : > { %v418_v20 = vadd.f32 %v417_v17, %v386_v12  ;;  %v483_v22 = vadd.f32 %v482_v19, %v452_v14 }
  0xe1   : > { %v419_v23 = vadd.f32 %v418_v20, %v387_v16  ;;  %v484_v24 = vadd.f32 %v483_v22, %v453_v18 }
  0xe3   : > { %v492_v25 = vrot.slane %v419_v23, 4  ;;  %v485_v26 = vadd.f32 %v484_v24, %v454_v21 }
  0xe5   : > { %v493_v27 = vadd.f32 %v492_v25, %v419_v23  ;;  %v499_v28 = vrot.slane %v485_v26, 4 }
  0xe7   : > { %v494_v29 = vrot.slane %v493_v27, 2  ;;  %v500_v30 = vadd.f32 %v499_v28, %v485_v26 }
  0xe9   : > { %v495_v31 = vadd.f32 %v494_v29, %v493_v27  ;;  %v501_v32 = vrot.slane %v500_v30, 2 }
  0xeb   : > { %v496_v33 = vrot.slane %v495_v31, 1  ;;  %v502_v34 = vadd.f32 %v501_v32, %v500_v30 }
  0xed   : > { %v497_v35 = vadd.f32 %v496_v33, %v495_v31  ;;  %v503_v36 = vrot.slane %v502_v34, 1 }
  0xef   : > { %v504_v37 = vadd.f32 %v503_v36, %v502_v34 }
  0xf1   : > { %v506_v38 = vsel %vm505_vm1, %v497_v35, %v504_v37 }
  0xf2   : > { %947 = vmatmul.mubr.f32.vlgmr.msra.gmra.mrb[0].mxu0 %v506_v38 }
 0x1c5   : > { %v589_v45 = vpop.f32.mrb[0].mxu0 }
 0x1c6   : > { %v593_v46 = vmul.f32 %v589_v45, %v589_v45  ;;  %v948_v47 = vpop.f32.mrb[1].mxu0 }
 0x1c8   : > { %v595_v48 = vrot.slane %v593_v46, 7 }
 0x1ca   : > { %v597_v49 = vsub.f32 %v589_v45, %v595_v48 }
 0x1cc   : > { %v598_v50 = vsel %vm505_vm1, %v589_v45, %v597_v49 }
 0x1cd   : > { %958 = vmatmul.mubr.msk.f32.vlgmr.msra.gmra.mrb[0].mxu1 %vm603_vm2, %v598_v50 }
 0x2a0   : > { %v673_v51 = vpop.f32.mrb[0].mxu1 }
 0x2a1   : > { %v677_v0 = vadd.f32 1e-06, %v673_v51  ;;  %v959_v52 = vpop.f32.mrb[1].mxu1 }
 0x2a3   : > { %1103 = vrsqrt.f32 %v677_v0 }
 0x2ad   : > { %v1104_v54 = vpop.eup %1103 }
 0x2ae   : > { %v686_v55 = vmul.f32 %v1104_v54, %v886_v53 }
 0x2b0   : > { %v689_v56 = vrot.slane %v686_v55, 1  ;;  %693 = vst [vmem:[%s342_s7 - $0x1] sm:$0x2] %v686_v55 }
 0x2b1   : > { %1260 = shalt.err (!%p1257_p0)
}
 0x2b2   : > { %s1261_s13 = scalar_lea.hbm %s1724_s16, 16  ;;  %s1265_s7 = scalar_lea.hbm %s1817_s5, 32 }
 0x2b3   : > { %p1262_p4 = scmp.ne.s32.totalorder %s1724_s16, %s1261_s13  ;;  %p1266_p12 = scmp.lt.u32.totalorder %s1724_s16, %s1817_s5 }
 0x2b4   : > { %p1267_p1 = scmp.lt.u32.totalorder %s1265_s7, %s1261_s13  ;;  %p1269_p8 = scmp.lt.u32.totalorder %s1261_s13, %s1724_s16 }
 0x2b5   : > { %p1263_p13 = pnand %p1262_p4, %p1597_p5 }
 0x2b6   : > { %p1268_p11 = por %p1267_p1, %p1266_p12 }
 0x2b7   : > { %p1264_p2 = pneg %p1263_p13 }
 0x2b8   : > { %p1270_p6 = por %p1269_p8, %p1268_p11 }
 0x2ba   : > { %p1271_p10 = pnand %p1270_p6, %p1264_p2 }
 0x2bc   : > { %1274 = shalt.err (!%p1271_p10)
}
 0x2bd   : > { %1008 = dma.vmem_to_hbm [thread:$0]  (%p1597_p5), %s1726_s9, 16, %s1724_s16, %s696_s21   ;;  %v691_v58 = vmul.f32 %v689_v56, %v673_v51 }
 0x2be   : > { %s1842_s27 = sld [smem:[#allocation23_spill]]  ;;  %s700_s13 = scalar_lea.sflag [#allocation15], %s1655_s20 }
 0x2bf   : > { %v692_v59 = vsub.f32 %v687_v57, %v691_v58  ;;  %s1275_s11 = scalar_lea.vmem %s1763_s6, 16  ;;  %s1382_s9 = smov [#allocation14]  }
 0x2c0   : > { %p1276_p3 = scmp.ne.s32.totalorder %s1763_s6, %s1275_s11  ;;  %s1279_s24 = sshll.u32 %s1382_s9, 4  ;;  %s1280_s24 = int_to_ptr.vmem [resolvable:$false] %s1279_s24 }
 0x2c1   : > { %694 = vst [vmem:[%s348_s14] sm:$0x1] %v692_v59  ;;  %s1281_s16 = scalar_lea.vmem %s1280_s24, 32  ;;  %p1282_p0 = scmp.lt.s32.totalorder %s1763_s6, %s1280_s24 }
 0x2c2   : > { %p1277_p7 = pnand %p1276_p3, %p1597_p5  ;;  %p1283_p4 = scmp.lt.s32.totalorder %s1281_s16, %s1275_s11 }
 0x2c4   : > { %s1760_s19 = scalar_lea.hbm %s1842_s27, %s887_s29  ;;  %p1278_p9 = pneg %p1277_p7 }
 0x2c5   : > { %p1284_p13 = por %p1283_p4, %p1282_p0 }
 0x2c7   : > { %p1285_p2 = pnand %p1284_p13, %p1278_p9 }
 0x2c9   : > { %1288 = shalt.err (!%p1285_p2)
}
 0x2ca   : > { %s1289_s20 = scalar_lea.hbm %s1760_s19, 16  ;;  %s1293_s21 = scalar_lea.hbm %s1842_s27, 32 }
 0x2cb   : > { %p1290_p12 = scmp.ne.s32.totalorder %s1760_s19, %s1289_s20  ;;  %p1294_p8 = scmp.lt.u32.totalorder %s1760_s19, %s1842_s27 }
 0x2cc   : > { %p1295_p6 = scmp.lt.u32.totalorder %s1293_s21, %s1289_s20  ;;  %p1297_p3 = scmp.lt.u32.totalorder %s1289_s20, %s1760_s19 }
 0x2cd   : > { %p1291_p1 = pnand %p1290_p12, %p1597_p5 }
 0x2ce   : > { %p1296_p10 = por %p1295_p6, %p1294_p8 }
 0x2cf   : > { %p1292_p11 = pneg %p1291_p1 }
 0x2d0   : > { %p1298_p7 = por %p1297_p3, %p1296_p10 }
 0x2d2   : > { %p1299_p9 = pnand %p1298_p7, %p1292_p11 }
 0x2d4   : > { %1302 = shalt.err (!%p1299_p9)
}
 0x2d5   : > { %1009 = dma.vmem_to_hbm [thread:$0]  (%p1597_p5), %s1763_s6, 16, %s1760_s19, %s700_s13  }
 0x2d6 PF: > { %s1843_s17 = sld [smem:[#allocation21_spill]]  ;;  %s1844_s18 = sld [smem:[#allocation22_spill]] }
 0x2d7   : > { %p1846_p4 = scmp.ge.s32.totalorder %s1369_s26, 2 }
 0x2dc   : > { %s737_s10 = sand.u32 1, %s1843_s17   ;;  %p1845_p0 = scmp.ne.s32.totalorder %s1844_s18, 0 }
 0x2dd   : > { %s738_s30 = scalar_lea.sflag [#allocation6], %s737_s10 }
 0x2de   : > { %p1030_p13 = pnand %p1846_p4, %p1845_p0 }
 0x2e0   : > { %1340 = dma.done.wait (!%p1030_p13), %s738_s30, 16  }
 0x2e1   : > { %1342 = vsyncadd (!%p1030_p13), %s738_s30, 4294967280  ;;  %s746_s11 = scalar_lea.sflag [#allocation15], %s737_s10 }
 0x2e2   : > { %1344 = dma.done.wait (!%p1030_p13), %s746_s11, 16  }
 0x2e3   : > { %1346 = vsyncadd (!%p1030_p13), %s746_s11, 4294967280  ;;  %s28_s26 = sadd.s32 1, %s1369_s26   ;;  %s1847_s21 = smov %s1353_s22 }
 0x2e4   : > { %p25_p2 = scmp.ge.s32.totalorder %s28_s26, 4   ;;  %s1848_s22 = smov %s1357_s23 }
 0x2e5   : > { %s1849_s23 = smov %s1606_s15  ;;  %s1850_s24 = smov %s1365_s25 }
 0x2e6   : > { %s1851_s25 = smov %s1853_s28  ;;  %27 = sbr.rel (!%p25_p2) target bundleno = 12 (0xc), region = 126 }
 0x2ed   :  { %750 = vsyncpa [#allocation5], 1 }
 0x2ee   :  { %752 = vsyncpa [#allocation5 + $0x1], 1 }
 0x2ef   :  { %753 = vsyncpa [#allocation8], 1 }
 0x2f0   :  { %754 = vsyncpa [#allocation11], 1 }
 0x2f1   :  { %755 = vsyncpa [#allocation6], 1 }
 0x2f2   :  { %757 = vsyncpa [#allocation6 + $0x1], 1 }
 0x2f3   :  { %758 = vsyncpa [#allocation15], 1 }
 0x2f4   :  { %760 = vsyncpa [#allocation15 + $0x1], 1 }

</bundles_post_ra>
